<compile_context>
chip_gen: v7x
topology: tpu7x:2x2x1
jax: 0.10.0
libtpu: 0.0.40
codegen_flags: <defaults>
</compile_context>

<pallas_src>
import jax
import jax.numpy as jnp
from jax.experimental import pallas as pl
from jax.experimental.pallas import tpu as pltpu

HIDDEN_PAD = 128  # pad the 64 / 64 / 32 hidden widths to a full 128-lane vreg


def _leaky_relu(x, slope=0.01):
    return jnp.where(x > 0, x, slope * x)


def _round_up(n, m):
    return ((n + m - 1) // m) * m


def qnetwork_kernel(x_ref, w1_ref, w2_ref, w3_ref, c_ref, o_ref):
    """c_ref is an (8, 128) f32 constants tile:
         rows 0..3 : biases b1..b4 (zero-padded to 128 lanes)
         row  4    : column 0 of w4 (the only meaningful output unit)
    """
    x = x_ref[...]                       # (tb, S) f32
    wdt = w1_ref.dtype                   # f32 (exact) or bf16 (v6e/v7x fast path)

    h = jnp.dot(x.astype(wdt), w1_ref[...],
                preferred_element_type=jnp.float32) + c_ref[0:1, :]
    h = _leaky_relu(h)

    h = jnp.dot(h.astype(wdt), w2_ref[...],
                preferred_element_type=jnp.float32) + c_ref[1:2, :]
    h = _leaky_relu(h)

    h = jnp.dot(h.astype(wdt), w3_ref[...],
                preferred_element_type=jnp.float32) + c_ref[2:3, :]
    h = _leaky_relu(h)

    # Layer 4 has a single output unit: use the VPU (multiply) + XLU (lane
    # reduce) instead of a 128x128 MXU pass that would mostly multiply zeros.
    w4_row = c_ref[4:5, :]                                   # (1, 128) f32
    b4 = c_ref[3:4, 0:1]                                     # (1, 1) f32
    q = jnp.sum(h * w4_row, axis=-1, keepdims=True) + b4     # (tb, 1) f32

    o_ref[...] = q.astype(o_ref.dtype)


def init_params(key, state_size):
    """Deterministic init mirroring the layer shapes of QNetwork.__init__."""
    dims = [(state_size, 64), (64, 64), (64, 32), (32, 1)]
    params = {}
    for i, (fan_in, fan_out) in enumerate(dims, start=1):
        key, kw, kb = jax.random.split(key, 3)
        bound = 1.0 / jnp.sqrt(jnp.float32(fan_in))
        params[f"w{i}"] = jax.random.uniform(
            kw, (fan_in, fan_out), jnp.float32, -bound, bound)
        params[f"b{i}"] = jax.random.uniform(
            kb, (1, fan_out), jnp.float32, -bound, bound)
    return params


def pad_params(params, state_size, matmul_dtype=jnp.float32):
    """Zero-pad to 128-lane tiles once (not per call).

    matmul_dtype: dtype of the w1/w2/w3 MXU operands. Use jnp.bfloat16 on
    v6e/v7x for ~3-4x MXU throughput (accumulation stays f32 in the kernel).
    """
    padded = {}
    in_dims = [state_size, HIDDEN_PAD, HIDDEN_PAD]
    for i in (1, 2, 3):
        w = params[f"w{i}"]
        fi, fo = w.shape
        wp = jnp.zeros((in_dims[i - 1], HIDDEN_PAD), jnp.float32)
        padded[f"w{i}"] = wp.at[:fi, :fo].set(w).astype(matmul_dtype)

    consts = jnp.zeros((8, HIDDEN_PAD), jnp.float32)
    for i in (1, 2, 3, 4):
        b = params[f"b{i}"].reshape(-1)
        consts = consts.at[i - 1, : b.shape[0]].set(b)
    w4_col = params["w4"][:, 0]                       # (32,)
    consts = consts.at[4, : w4_col.shape[0]].set(w4_col)
    padded["consts"] = consts                         # stays f32 (VPU path)
    return padded


def _choose_tile(B, batch_tile):
    """Pick a sublane-aligned batch tile that (a) caps VMEM/tile at batch_tile,
    (b) keeps >=2 grid steps when B >= 16 (v7x has 2 TensorCores), and
    (c) minimizes tail padding for awkward batch sizes."""
    k = pl.cdiv(B, batch_tile)
    if B >= 16:
        k = max(k, 2)
    tb = _round_up(pl.cdiv(B, k), 8)
    Bp = _round_up(B, tb)
    return tb, Bp


def qnetwork_forward(x, padded, *, batch_tile=1024):
    """x: (B, state_size) f32. padded: output of pad_params. Returns (B, 1) f32."""
    B, S = x.shape
    tb, Bp = _choose_tile(B, batch_tile)
    if Bp != B:
        x = jnp.pad(x, ((0, Bp - B), (0, 0)))

    w_itemsize = padded["w1"].dtype.itemsize
    cost = pl.CostEstimate(
        flops=2 * Bp * HIDDEN_PAD * (S + 2 * HIDDEN_PAD) + 2 * Bp * HIDDEN_PAD,
        transcendentals=0,
        bytes_accessed=(Bp * S * 4 + Bp * 4
                        + (S * HIDDEN_PAD + 2 * HIDDEN_PAD * HIDDEN_PAD) * w_itemsize
                        + 8 * HIDDEN_PAD * 4),
    )

    const = lambda i: (0, 0)  # weights / constants stay VMEM-resident across steps
    out = pl.pallas_call(
        qnetwork_kernel,
        out_shape=jax.ShapeDtypeStruct((Bp, 1), jnp.float32),
        grid=(Bp // tb,),
        in_specs=[
            pl.BlockSpec((tb, S), lambda i: (i, 0)),
            pl.BlockSpec((S, HIDDEN_PAD), const),
            pl.BlockSpec((HIDDEN_PAD, HIDDEN_PAD), const),
            pl.BlockSpec((HIDDEN_PAD, HIDDEN_PAD), const),
            pl.BlockSpec((8, HIDDEN_PAD), const),
        ],
        out_specs=pl.BlockSpec((tb, 1), lambda i: (i, 0)),
        compiler_params=pltpu.CompilerParams(
            dimension_semantics=("parallel",)),
        cost_estimate=cost,
    )(x, padded["w1"], padded["w2"], padded["w3"], padded["consts"])

    return out[:B]  # (B, 1) compact q-values


def reference_forward(x, params):
    """Plain-JAX reference (true-f32 GEMMs, unpadded) for correctness check."""
    p = jax.lax.Precision.HIGHEST
    h = _leaky_relu(jnp.dot(x, params["w1"], precision=p) + params["b1"])
    h = _leaky_relu(jnp.dot(h, params["w2"], precision=p) + params["b2"])
    h = _leaky_relu(jnp.dot(h, params["w3"], precision=p) + params["b3"])
    return jnp.dot(h, params["w4"], precision=p) + params["b4"]


if __name__ == "__main__":
    key = jax.random.PRNGKey(0)
    state_size = 16

    kx1, kx2, kp = jax.random.split(key, 3)
    params = init_params(kp, state_size)
    padded_f32 = pad_params(params, state_size)

    # Small batch (single grid step, minimal tile).
    x_small = jax.random.normal(kx1, (8, state_size), jnp.float32)
    out_small = jax.block_until_ready(qnetwork_forward(x_small, padded_f32))
    ref_small = reference_forward(x_small, params)
    assert out_small.shape == (8, 1)
    assert jnp.allclose(out_small, ref_small, atol=1e-3, rtol=1e-3), "small-batch mismatch"

    # Larger, non-multiple batch: exercises adaptive tiling (tb=152, Bp=304),
    # a 2-step parallel grid and the tail-row padding path.
    x_big = jax.random.normal(kx2, (300, state_size), jnp.float32)
    out_big = jax.block_until_ready(qnetwork_forward(x_big, padded_f32))
    ref_big = reference_forward(x_big, params)
    assert out_big.shape == (300, 1)
    assert jnp.allclose(out_big, ref_big, atol=1e-3, rtol=1e-3), "big-batch mismatch"

    # Optional bf16 MXU-operand path (v6e/v7x fast path); f32 accumulation.
    padded_bf16 = pad_params(params, state_size, matmul_dtype=jnp.bfloat16)
    out_bf16 = jax.block_until_ready(qnetwork_forward(x_big, padded_bf16))
    assert out_bf16.shape == (300, 1)
    assert jnp.allclose(out_bf16, ref_big, atol=5e-2, rtol=5e-2), "bf16-path mismatch"

    print("KERNEL_OK")
</pallas_src>

<mosaic_0001>
module attributes {stable_mosaic.version = 11 : i64} {
  func.func @qnetwork_kernel(%arg0: i32, %arg1: memref<8x16xf32, #tpu.memory_space<vmem>>, %arg2: memref<16x128xf32, #tpu.memory_space<vmem>>, %arg3: memref<128x128xf32, #tpu.memory_space<vmem>>, %arg4: memref<128x128xf32, #tpu.memory_space<vmem>>, %arg5: memref<8x128xf32, #tpu.memory_space<vmem>>, %arg6: memref<8x1xf32, #tpu.memory_space<vmem>>) attributes {dimension_semantics = [#tpu.dimension_semantics<parallel>], iteration_bounds = array<i64: 1>, scalar_prefetch = 0 : i64, scratch_operands = 0 : i64, tpu.core_type = #tpu.core_type<tc>, window_params = [{transform_indices = @transform_0, window_bounds = array<i64: 8, 16>}, {pipeline_mode = #tpu.pipeline_mode<synchronous>, transform_indices = @transform_1, window_bounds = array<i64: 16, 128>}, {pipeline_mode = #tpu.pipeline_mode<synchronous>, transform_indices = @transform_2, window_bounds = array<i64: 128, 128>}, {pipeline_mode = #tpu.pipeline_mode<synchronous>, transform_indices = @transform_3, window_bounds = array<i64: 128, 128>}, {pipeline_mode = #tpu.pipeline_mode<synchronous>, transform_indices = @transform_4, window_bounds = array<i64: 8, 128>}, {transform_indices = @transform_5, window_bounds = array<i64: 8, 1>}]} {
    %c0 = arith.constant 0 : index
    %c0_0 = arith.constant 0 : index
    %0 = vector.load %arg1[%c0, %c0_0] : memref<8x16xf32, #tpu.memory_space<vmem>>, vector<8x16xf32>
    %c0_1 = arith.constant 0 : index
    %c0_2 = arith.constant 0 : index
    %1 = vector.load %arg2[%c0_1, %c0_2] : memref<16x128xf32, #tpu.memory_space<vmem>>, vector<16x128xf32>
    %cst = arith.constant dense<0.000000e+00> : vector<8x128xf32>
    %2 = tpu.matmul %0, %1, %cst {dimension_numbers = #tpu.dot_dimension_numbers<[1], [0], [0], [1], [0, 0, 1, 1], [], []>} : vector<8x16xf32>, vector<16x128xf32>, vector<8x128xf32> -> vector<8x128xf32>
    %c0_3 = arith.constant 0 : index
    %c0_4 = arith.constant 0 : index
    %3 = vector.load %arg5[%c0_3, %c0_4] : memref<8x128xf32, #tpu.memory_space<vmem>>, vector<1x128xf32>
    %4 = vector.broadcast %3 : vector<1x128xf32> to vector<8x128xf32>
    %5 = arith.addf %2, %4 : vector<8x128xf32>
    %cst_5 = arith.constant 0.000000e+00 : f32
    %6 = vector.broadcast %cst_5 : f32 to vector<8x128xf32>
    %7 = arith.cmpf ogt, %5, %6 : vector<8x128xf32>
    %cst_6 = arith.constant 0.00999999977 : f32
    %8 = vector.broadcast %cst_6 : f32 to vector<8x128xf32>
    %9 = arith.mulf %8, %5 : vector<8x128xf32>
    %10 = arith.select %7, %5, %9 : vector<8x128xi1>, vector<8x128xf32>
    %c0_7 = arith.constant 0 : index
    %c0_8 = arith.constant 0 : index
    %11 = vector.load %arg3[%c0_7, %c0_8] : memref<128x128xf32, #tpu.memory_space<vmem>>, vector<128x128xf32>
    %cst_9 = arith.constant dense<0.000000e+00> : vector<8x128xf32>
    %12 = tpu.matmul %10, %11, %cst_9 {dimension_numbers = #tpu.dot_dimension_numbers<[1], [0], [0], [1], [0, 0, 1, 1], [], []>} : vector<8x128xf32>, vector<128x128xf32>, vector<8x128xf32> -> vector<8x128xf32>
    %c1 = arith.constant 1 : index
    %c0_10 = arith.constant 0 : index
    %13 = vector.load %arg5[%c1, %c0_10] : memref<8x128xf32, #tpu.memory_space<vmem>>, vector<1x128xf32>
    %14 = vector.broadcast %13 : vector<1x128xf32> to vector<8x128xf32>
    %15 = arith.addf %12, %14 : vector<8x128xf32>
    %cst_11 = arith.constant 0.000000e+00 : f32
    %16 = vector.broadcast %cst_11 : f32 to vector<8x128xf32>
    %17 = arith.cmpf ogt, %15, %16 : vector<8x128xf32>
    %cst_12 = arith.constant 0.00999999977 : f32
    %18 = vector.broadcast %cst_12 : f32 to vector<8x128xf32>
    %19 = arith.mulf %18, %15 : vector<8x128xf32>
    %20 = arith.select %17, %15, %19 : vector<8x128xi1>, vector<8x128xf32>
    %c0_13 = arith.constant 0 : index
    %c0_14 = arith.constant 0 : index
    %21 = vector.load %arg4[%c0_13, %c0_14] : memref<128x128xf32, #tpu.memory_space<vmem>>, vector<128x128xf32>
    %cst_15 = arith.constant dense<0.000000e+00> : vector<8x128xf32>
    %22 = tpu.matmul %20, %21, %cst_15 {dimension_numbers = #tpu.dot_dimension_numbers<[1], [0], [0], [1], [0, 0, 1, 1], [], []>} : vector<8x128xf32>, vector<128x128xf32>, vector<8x128xf32> -> vector<8x128xf32>
    %c2 = arith.constant 2 : index
    %c0_16 = arith.constant 0 : index
    %23 = vector.load %arg5[%c2, %c0_16] : memref<8x128xf32, #tpu.memory_space<vmem>>, vector<1x128xf32>
    %24 = vector.broadcast %23 : vector<1x128xf32> to vector<8x128xf32>
    %25 = arith.addf %22, %24 : vector<8x128xf32>
    %cst_17 = arith.constant 0.000000e+00 : f32
    %26 = vector.broadcast %cst_17 : f32 to vector<8x128xf32>
    %27 = arith.cmpf ogt, %25, %26 : vector<8x128xf32>
    %cst_18 = arith.constant 0.00999999977 : f32
    %28 = vector.broadcast %cst_18 : f32 to vector<8x128xf32>
    %29 = arith.mulf %28, %25 : vector<8x128xf32>
    %30 = arith.select %27, %25, %29 : vector<8x128xi1>, vector<8x128xf32>
    %c4 = arith.constant 4 : index
    %c0_19 = arith.constant 0 : index
    %31 = vector.load %arg5[%c4, %c0_19] : memref<8x128xf32, #tpu.memory_space<vmem>>, vector<1x128xf32>
    %c3 = arith.constant 3 : index
    %c0_20 = arith.constant 0 : index
    %32 = vector.load %arg5[%c3, %c0_20] : memref<8x128xf32, #tpu.memory_space<vmem>>, vector<1x1xf32>
    %33 = vector.broadcast %31 : vector<1x128xf32> to vector<8x128xf32>
    %34 = arith.mulf %30, %33 : vector<8x128xf32>
    %cst_21 = arith.constant dense<0.000000e+00> : vector<8xf32>
    %35 = vector.multi_reduction <add>, %34, %cst_21 [1] : vector<8x128xf32> to vector<8xf32>
    %36 = vector.shape_cast %35 : vector<8xf32> to vector<8x1xf32>
    %37 = vector.broadcast %32 : vector<1x1xf32> to vector<8x1xf32>
    %38 = arith.addf %36, %37 : vector<8x1xf32>
    %c0_22 = arith.constant 0 : index
    %c0_23 = arith.constant 0 : index
    %39 = vector.load %arg6[%c0_22, %c0_23] : memref<8x1xf32, #tpu.memory_space<vmem>>, vector<8x1xf32>
    tpu.vector_store %arg6[%c0_22, %c0_23], %38 {strides = array<i32>} : memref<8x1xf32, #tpu.memory_space<vmem>>, vector<8x1xf32>,
    return
  }
  func.func @transform_0(%arg0: i32) -> (i32, i32) {
    %c0_i32 = arith.constant 0 : i32
    %c0_i32_0 = arith.constant 0 : i32
    return %arg0, %c0_i32 : i32, i32
  }
  func.func @transform_1(%arg0: i32) -> (i32, i32) {
    %c0_i32 = arith.constant 0 : i32
    %c0_i32_0 = arith.constant 0 : i32
    %c0_i32_1 = arith.constant 0 : i32
    return %c0_i32, %c0_i32_0 : i32, i32
  }
  func.func @transform_2(%arg0: i32) -> (i32, i32) {
    %c0_i32 = arith.constant 0 : i32
    %c0_i32_0 = arith.constant 0 : i32
    %c0_i32_1 = arith.constant 0 : i32
    return %c0_i32, %c0_i32_0 : i32, i32
  }
  func.func @transform_3(%arg0: i32) -> (i32, i32) {
    %c0_i32 = arith.constant 0 : i32
    %c0_i32_0 = arith.constant 0 : i32
    %c0_i32_1 = arith.constant 0 : i32
    return %c0_i32, %c0_i32_0 : i32, i32
  }
  func.func @transform_4(%arg0: i32) -> (i32, i32) {
    %c0_i32 = arith.constant 0 : i32
    %c0_i32_0 = arith.constant 0 : i32
    %c0_i32_1 = arith.constant 0 : i32
    return %c0_i32, %c0_i32_0 : i32, i32
  }
  func.func @transform_5(%arg0: i32) -> (i32, i32) {
    %c0_i32 = arith.constant 0 : i32
    %c0_i32_0 = arith.constant 0 : i32
    return %arg0, %c0_i32 : i32, i32
  }
}

</mosaic_0001>

<bundles_post_ra>
// kernel: tpu_custom_call.1
= control target key start
LH: loop header
LB: loop body
LE: loop exit
PB: predicated region body
PF: predicated region fallthrough
CT: control target
= control target key end

     0   :  { %10 = vsyncpa [#allocation3], 0  ;;  %s777_s0 = inlined_call_operand.hbm [shape: f32[8,16], index: 0, kind: input, shape index: {}]   ;;  %s778_s1 = inlined_call_operand.hbm [shape: f32[16,128], index: 1, kind: input, shape index: {}]   ;;  %s779_s2 = inlined_call_operand.hbm [shape: f32[128,128], index: 2, kind: input, shape index: {}]   ;;  %s780_s3 = inlined_call_operand.hbm [shape: f32[128,128], index: 3, kind: input, shape index: {}]   ;;  %s781_s4 = inlined_call_operand.vmem [shape: f32[8,128], index: 4, kind: input, shape index: {}]   ;;  %s782_s5 = inlined_call_operand.vmem [shape: f32[8,1], index: 5, kind: output, shape index: {}]  }
   0x1   :  { %11 = vsyncpa [#allocation5], 0 }
   0x2   :  { %12 = vsyncpa [#allocation8], 0  ;;  %s643_s18 = smov [#allocation4]   ;;  %s549_s22 = scalar_lea.hbm %s778_s1, 256 }
   0x3   :  { %s28_s19 = sshll.u32 %s643_s18, 4  ;;  %p550_p0 = scmp.ne.s32.totalorder %s778_s1, %s549_s22  ;;  %s29_s19 = int_to_ptr.vmem [resolvable:$true] %s28_s19 }
   0x4   :  { %p553_p1 = scmp.lt.u32.totalorder %s549_s22, %s778_s1 }
   0x6   :  { %p555_p2 = pnand %p553_p1, %p550_p0 }
   0x8   :  { %558 = shalt.err (!%p555_p2)
}
   0x9   :  { %s559_s27 = scalar_lea.vmem %s29_s19, 256  ;;  %p564_p4 = scmp.lt.s32.totalorder %s29_s19, %s29_s19 }
   0xa   :  { %p560_p3 = scmp.ne.s32.totalorder %s29_s19, %s559_s27  ;;  %p565_p5 = scmp.lt.s32.totalorder %s559_s27, %s559_s27 }
   0xc   :  { %p566_p6 = por %p565_p5, %p564_p4 }
   0xe   :  { %p567_p7 = pnand %p566_p6, %p560_p3 }
  0x10   :  { %570 = shalt.err (!%p567_p7)
}
  0x11   :  { %s644_s28 = smov 128   ;;  %s645_s29 = smov 8  }
  0x12   :  { %34 = dma.hbm_to_vmem [thread:$0]  %s778_s1, 256, %s29_s19, [#allocation5], %s644_s28, %s644_s28, %s645_s29  }
  0x13   :  { %s646_s7 = smov [#allocation2]   ;;  %s647_s9 = smov [#allocation6]  }
  0x14   :  { %s19_s8 = sshll.u32 %s646_s7, 4  ;;  %s40_s10 = sshll.u32 %s647_s9, 4  ;;  %s20_s8 = int_to_ptr.vmem [resolvable:$true] %s19_s8  ;;  %s41_s10 = int_to_ptr.vmem [resolvable:$true] %s40_s10 }
  0x15   :  { %s571_s13 = scalar_lea.hbm %s777_s0, 128 }
  0x16   :  { %p572_p8 = scmp.ne.s32.totalorder %s777_s0, %s571_s13  ;;  %p575_p9 = scmp.lt.u32.totalorder %s571_s13, %s777_s0 }
  0x18   :  { %p577_p10 = pnand %p575_p9, %p572_p8 }
  0x1a   :  { %580 = shalt.err (!%p577_p10)
}
  0x1b   :  { %s581_s1 = scalar_lea.vmem %s20_s8, 128  ;;  %p586_p12 = scmp.lt.s32.totalorder %s20_s8, %s20_s8 }
  0x1c   :  { %p582_p11 = scmp.ne.s32.totalorder %s20_s8, %s581_s1  ;;  %p587_p13 = scmp.lt.s32.totalorder %s581_s1, %s581_s1 }
  0x1e   :  { %p588_p0 = por %p587_p13, %p586_p12 }
  0x20   :  { %p589_p1 = pnand %p588_p0, %p582_p11 }
  0x22   :  { %592 = shalt.err (!%p589_p1)
}
  0x23   :  { %22 = dma.hbm_to_vmem [thread:$0]  %s777_s0, 128, %s20_s8, [#allocation3]  }
  0x24   :  { %s593_s22 = scalar_lea.hbm %s779_s2, 2048 }
  0x25   :  { %p594_p2 = scmp.ne.s32.totalorder %s779_s2, %s593_s22  ;;  %p597_p3 = scmp.lt.u32.totalorder %s593_s22, %s779_s2 }
  0x27   :  { %p599_p4 = pnand %p597_p3, %p594_p2 }
  0x29   :  { %602 = shalt.err (!%p599_p4)
}
  0x2a   :  { %s603_s27 = scalar_lea.vmem %s41_s10, 2048  ;;  %p608_p6 = scmp.lt.s32.totalorder %s41_s10, %s41_s10 }
  0x2b   :  { %p604_p5 = scmp.ne.s32.totalorder %s41_s10, %s603_s27  ;;  %p609_p7 = scmp.lt.s32.totalorder %s603_s27, %s603_s27 }
  0x2d   :  { %p610_p8 = por %p609_p7, %p608_p6 }
  0x2f   :  { %p611_p9 = pnand %p610_p8, %p604_p5 }
  0x31   :  { %614 = shalt.err (!%p611_p9)
}
  0x32   :  { %46 = dma.hbm_to_vmem [thread:$0]  %s779_s2, 2048, %s41_s10, [#allocation5], %s644_s28, %s644_s28, %s645_s29  }
  0x33   :  { %s648_s6 = smov [#allocation7]   ;;  %s615_s11 = scalar_lea.hbm %s780_s3, 2048 }
  0x34   :  { %s52_s7 = sshll.u32 %s648_s6, 4  ;;  %p616_p10 = scmp.ne.s32.totalorder %s780_s3, %s615_s11  ;;  %s53_s7 = int_to_ptr.vmem [resolvable:$true] %s52_s7 }
  0x35   :  { %p619_p11 = scmp.lt.u32.totalorder %s615_s11, %s780_s3 }
  0x37   :  { %p621_p12 = pnand %p619_p11, %p616_p10 }
  0x39   :  { %624 = shalt.err (!%p621_p12)
}
  0x3a   :  { %s625_s16 = scalar_lea.vmem %s53_s7, 2048  ;;  %p630_p0 = scmp.lt.s32.totalorder %s53_s7, %s53_s7 }
  0x3b   :  { %p626_p13 = scmp.ne.s32.totalorder %s53_s7, %s625_s16  ;;  %p631_p1 = scmp.lt.s32.totalorder %s625_s16, %s625_s16 }
  0x3d   :  { %p632_p2 = por %p631_p1, %p630_p0 }
  0x3f   :  { %p633_p3 = pnand %p632_p2, %p626_p13 }
  0x41   :  { %636 = shalt.err (!%p633_p3)
}
  0x42   :  { %58 = dma.hbm_to_vmem [thread:$0]  %s780_s3, 2048, %s53_s7, [#allocation8], %s644_s28, %s644_s28, %s645_s29  }
  0x43   :  { %637 = dma.done.wait [#allocation3], 128  }
  0x44   :  { %638 = vsyncadd [#allocation3], 4294967168 }
  0x45   :  { %639 = dma.done.wait [#allocation5], 2304  }
  0x46   :  { %640 = vsyncadd [#allocation5], 4294964992 }
  0x47   :  { %641 = dma.done.wait [#allocation8], 2048  }
  0x48   :  { %642 = vsyncadd [#allocation8], 4294965248  ;;  %v649_v0 = vmov 0.0|0.0   ;;  %vm650_vm0 = vmmov 0   ;;  %v651_v1 = vmov 0.0   ;;  %v74_v2 = vld [vmem:[#allocation4] sm:$0xff] }
  0x49   :  { %489 = vmatprep.subr.bf16.mxu0 %v649_v0  ;;  %416 = vmatprep.mubr.msk.f32.mxu0 %vm650_vm0, %v651_v1  ;;  %v75_v3 = vld [vmem:[#allocation4 + $0x8] sm:$0xff]  ;;  %v158_v5 = vld [vmem:[#allocation6] sm:$0xff]  ;;  %v159_v6 = vld [vmem:[#allocation6 + $0x8] sm:$0xff]  ;;  %vm81_vm1 = vcmask 130048   ;;  %vm360_vm5 = vcmask 7168  }
  0x4a   :  { %492 = vmatprep.subr.bf16.mxu1 %v649_v0  ;;  %451 = vmatprep.mubr.msk.f32.mxu1 %vm650_vm0, %v651_v1  ;;  %v490_v4 = vpack.c.bf16 %v75_v3, %v74_v2  ;;  %v160_v7 = vld [vmem:[#allocation6 + $0x10] sm:$0xff]  ;;  %v493_v8 = vpack.c.bf16 %v159_v6, %v158_v5  ;;  %v161_v9 = vld [vmem:[#allocation6 + $0x18] sm:$0xff]  ;;  %v73_v10 = vld [vmem:[#allocation2] sm:$0xff] }
  0x4b   :  { %v496_v11 = vpack.c.bf16 %v161_v9, %v160_v7  ;;  %v162_v12 = vld [vmem:[#allocation6 + $0x20] sm:$0xff]  ;;  %v163_v13 = vld [vmem:[#allocation6 + $0x28] sm:$0xff]  ;;  %v164_v15 = vld [vmem:[#allocation6 + $0x30] sm:$0xff] }
  0x4c   :  { %491 = vmatpush3.bf16.msra.mxu0 %v490_v4  ;;  %494 = vmatpush3.bf16.msra.mxu1 %v493_v8  ;;  %v499_v14 = vpack.c.bf16 %v163_v13, %v162_v12  ;;  %v165_v16 = vld [vmem:[#allocation6 + $0x38] sm:$0xff]  ;;  %v166_v18 = vld [vmem:[#allocation6 + $0x40] sm:$0xff]  ;;  %v167_v19 = vld [vmem:[#allocation6 + $0x48] sm:$0xff] }
  0x4d   :  { %516 = vmatprep.subr.bf16.mxu0 %v649_v0  ;;  %495 = vmatprep.subr.bf16.mxu1 %v649_v0  ;;  %v502_v17 = vpack.c.bf16 %v165_v16, %v164_v15  ;;  %v505_v20 = vpack.c.bf16 %v167_v19, %v166_v18  ;;  %v168_v21 = vld [vmem:[#allocation6 + $0x50] sm:$0xff]  ;;  %v169_v22 = vld [vmem:[#allocation6 + $0x58] sm:$0xff]  ;;  %v170_v24 = vld [vmem:[#allocation6 + $0x60] sm:$0xff] }
  0x4e   :  { %v508_v23 = vpack.c.bf16 %v169_v22, %v168_v21  ;;  %v171_v25 = vld [vmem:[#allocation6 + $0x68] sm:$0xff]  ;;  %v172_v27 = vld [vmem:[#allocation6 + $0x70] sm:$0xff]  ;;  %v173_v28 = vld [vmem:[#allocation6 + $0x78] sm:$0xff] }
  0x4f   :  { %417 = vmatmul.mubr.msk.f32.vlgmr.msra.gmra.mrb[0].mxu0 %vm81_vm1, %v73_v10  ;;  %v511_v26 = vpack.c.bf16 %v171_v25, %v170_v24  ;;  %v514_v29 = vpack.c.bf16 %v173_v28, %v172_v27  ;;  %v252_v30 = vld [vmem:[#allocation7] sm:$0xff]  ;;  %v253_v31 = vld [vmem:[#allocation7 + $0x8] sm:$0xff]  ;;  %v254_v32 = vld [vmem:[#allocation7 + $0x10] sm:$0xff] }
  0x50   :  { %486 = vmatprep.mubr.msk.f32.mxu0 %vm650_vm0, %v651_v1  ;;  %497 = vmatpush3.bf16.msra.mxu1 %v496_v11  ;;  %v517_v33 = vpack.c.bf16 %v253_v31, %v252_v30  ;;  %v255_v34 = vld [vmem:[#allocation7 + $0x18] sm:$0xff]  ;;  %v256_v36 = vld [vmem:[#allocation7 + $0x20] sm:$0xff]  ;;  %v257_v37 = vld [vmem:[#allocation7 + $0x28] sm:$0xff] }
  0x51   :  { %498 = vmatprep.subr.bf16.mxu1 %v649_v0  ;;  %v520_v35 = vpack.c.bf16 %v255_v34, %v254_v32  ;;  %v523_v38 = vpack.c.bf16 %v257_v37, %v256_v36  ;;  %v258_v39 = vld [vmem:[#allocation7 + $0x30] sm:$0xff]  ;;  %v259_v40 = vld [vmem:[#allocation7 + $0x38] sm:$0xff]  ;;  %v260_v42 = vld [vmem:[#allocation7 + $0x40] sm:$0xff] }
  0x52   :  { %518 = vmatpush3.bf16.msra.mxu0 %v517_v33  ;;  %v526_v41 = vpack.c.bf16 %v259_v40, %v258_v39  ;;  %v261_v43 = vld [vmem:[#allocation7 + $0x48] sm:$0xff]  ;;  %v262_v45 = vld [vmem:[#allocation7 + $0x50] sm:$0xff]  ;;  %v263_v46 = vld [vmem:[#allocation7 + $0x58] sm:$0xff] }
  0x53   :  { %519 = vmatprep.subr.bf16.mxu0 %v649_v0  ;;  %v529_v44 = vpack.c.bf16 %v261_v43, %v260_v42  ;;  %v532_v47 = vpack.c.bf16 %v263_v46, %v262_v45  ;;  %v264_v48 = vld [vmem:[#allocation7 + $0x60] sm:$0xff]  ;;  %v265_v49 = vld [vmem:[#allocation7 + $0x68] sm:$0xff]  ;;  %v266_v57 = vld [vmem:[#allocation7 + $0x70] sm:$0xff] }
  0x54   :  { %500 = vmatpush3.bf16.msra.mxu1 %v499_v14  ;;  %v535_v50 = vpack.c.bf16 %v265_v49, %v264_v48  ;;  %v369_v51 = vld [vmem:[%s781_s4] ss:$0 sm:$0xff]  ;;  %v267_v58 = vld [vmem:[#allocation7 + $0x78] sm:$0xff]  ;;  %v371_v60 = vld [vmem:[%s781_s4 + $0x1] ss:$0 sm:$0xff] }
  0x55   :  { %501 = vmatprep.subr.bf16.mxu1 %v649_v0  ;;  %v538_v59 = vpack.c.bf16 %v267_v58, %v266_v57  ;;  %v372_v2 = vld [vmem:[%s781_s4 + $0x2] ss:$0 sm:$0xff]  ;;  %v373_v7 = vld [vmem:[%s781_s4 + $0x4] ss:$0 sm:$0xff]  ;;  %v374_v10 = vld [vmem:[%s781_s4 + $0x3] ss:$0 sm:$0xff] }
  0x56   :  { %521 = vmatpush3.bf16.msra.mxu0 %v520_v35 }
  0x57   :  { %522 = vmatprep.subr.bf16.mxu0 %v649_v0 }
  0x58   :  { %503 = vmatpush3.bf16.msra.mxu1 %v502_v17 }
  0x59   :  { %504 = vmatprep.subr.bf16.mxu1 %v649_v0 }
  0x5a   :  { %524 = vmatpush3.bf16.msra.mxu0 %v523_v38 }
  0x5b   :  { %525 = vmatprep.subr.bf16.mxu0 %v649_v0 }
  0x5c   :  { %506 = vmatpush3.bf16.msra.mxu1 %v505_v20 }
  0x5d   :  { %507 = vmatprep.subr.bf16.mxu1 %v649_v0 }
  0x5e   :  { %527 = vmatpush3.bf16.msra.mxu0 %v526_v41 }
  0x5f   :  { %528 = vmatprep.subr.bf16.mxu0 %v649_v0 }
  0x60   :  { %509 = vmatpush3.bf16.msra.mxu1 %v508_v23 }
  0x61   :  { %510 = vmatprep.subr.bf16.mxu1 %v649_v0 }
  0x62   :  { %530 = vmatpush3.bf16.msra.mxu0 %v529_v44 }
  0x63   :  { %531 = vmatprep.subr.bf16.mxu0 %v649_v0 }
  0x64   :  { %512 = vmatpush3.bf16.msra.mxu1 %v511_v26 }
  0x65   :  { %513 = vmatprep.subr.bf16.mxu1 %v649_v0 }
  0x66   :  { %533 = vmatpush3.bf16.msra.mxu0 %v532_v47 }
  0x67   :  { %534 = vmatprep.subr.bf16.mxu0 %v649_v0 }
  0x68   :  { %515 = vmatpush3.bf16.msra.mxu1 %v514_v29 }
  0x6a   :  { %536 = vmatpush3.bf16.msra.mxu0 %v535_v50 }
  0x6b   :  { %537 = vmatprep.subr.bf16.mxu0 %v649_v0 }
  0x6e   :  { %539 = vmatpush3.bf16.msra.mxu0 %v538_v59 }
 0x122   :  { %v151_v52 = vpop.f32.mrb[0].mxu0 }
 0x123   :  { %v152_v53 = vadd.f32 %v369_v51, %v151_v52  ;;  %v418_v54 = vpop.f32.mrb[1].mxu0 }
 0x125   :  { %v156_v55 = vmul.f32 0.01, %v152_v53  ;;  %vm155_vm2 = vcmp.gt.f32.partialorder %v152_v53, 0.0 }
 0x127   :  { %v157_v56 = vsel %vm155_vm2, %v152_v53, %v156_v55 }
 0x128   :  { %452 = vmatmul.mubr.f32.vlgmr.msra.gmra.mrb[0].mxu1 %v157_v56 }
 0x1fb   :  { %v245_v61 = vpop.f32.mrb[0].mxu1 }
 0x1fc   :  { %v246_v62 = vadd.f32 %v371_v60, %v245_v61  ;;  %v453_v63 = vpop.f32.mrb[1].mxu1 }
 0x1fe   :  { %vm249_vm3 = vcmp.gt.f32.partialorder %v246_v62, 0.0  ;;  %v250_v0 = vmul.f32 0.01, %v246_v62 }
 0x200   :  { %v251_v1 = vsel %vm249_vm3, %v246_v62, %v250_v0 }
 0x201   :  { %487 = vmatmul.mubr.f32.vlgmr.msra.gmra.mrb[2].mxu0 %v251_v1 }
 0x2d4   :  { %v339_v3 = vpop.f32.mrb[2].mxu0 }
 0x2d5   :  { %v340_v4 = vadd.f32 %v372_v2, %v339_v3  ;;  %v488_v5 = vpop.f32.mrb[3].mxu0 }
 0x2d7   :  { %v344_v6 = vmul.f32 0.01, %v340_v4  ;;  %vm343_vm4 = vcmp.gt.f32.partialorder %v340_v4, 0.0 }
 0x2d9   :  { %v345_v8 = vsel %vm343_vm4, %v340_v4, %v344_v6 }
 0x2da   :  { %v352_v9 = vmul.f32 %v373_v7, %v345_v8 }
 0x2dc   :  { %353 = vadd.xlane.f32.xlu0 %v352_v9 }
 0x369   :  { %v354_v11 = vpop.xlane.xlu0 %353 }
 0x36a   :  { %v359_v12 = vadd.f32 %v374_v10, %v354_v11 }
 0x36c   :  { %361 = vst.msk [vmem:[%s782_s5] sm:$0xff] %vm360_vm5, %v359_v12 }
 0x36d   :  { %366 = vsyncpa [#allocation3], 1 }
 0x36e   :  { %367 = vsyncpa [#allocation5], 1 }
 0x36f   :  { %368 = vsyncpa [#allocation8], 1 }

</bundles_post_ra>
